<compile_context>
chip_gen: v7x
topology: tpu7x:2x2x1
jax: 0.10.0
libtpu: 0.0.40
codegen_flags: <defaults>
</compile_context>

<pallas_src>
import functools

import jax
import jax.numpy as jnp
from jax.experimental import pallas as pl
from jax.experimental.pallas import tpu as pltpu


def _round_up(x, m):
    return ((x + m - 1) // m) * m


_TM_MAX = 512                      # destination-row tile upper bound
_TK_MAX = 2048                     # source-row tile upper bound
_VMEM_BUDGET = 40 * 1024 * 1024    # target double-buffered working set
_VMEM_LIMIT = 48 * 1024 * 1024     # scoped VMEM limit (<= v7x's 64 MiB physical)


def _layer_vmem_bytes(tm, tk, c_in_pad, c_out_pad, out_bytes):
    """Approximate VMEM working set: double-buffered I/O + resident scratch."""
    a = 2 * tm * tk * 2                      # adjacency tile (bf16)
    xs = 2 * tk * c_in_pad * 2               # source features (bf16)
    xd = 2 * tm * c_in_pad * 2               # dst/root view (bf16)
    w = 2 * 2 * c_in_pad * c_out_pad * 2     # W_l + W_r (bf16)
    b = 2 * c_out_pad * 4                    # bias (f32)
    o = 2 * tm * c_out_pad * out_bytes       # output tile
    acc = tm * c_in_pad * 4                  # aggregation accumulator (f32)
    dst = tm * c_out_pad * 4                 # dst-linear scratch (f32)
    deg = tm * 128 * 4                       # (tm,1) deg scratch, lane-padded
    return a + xs + xd + w + b + o + acc + dst + deg


# ----------------------------------------------------------------------------
# Pallas kernel: one SAGEConv layer (tiled aggregation + split linear epilogue)
# ----------------------------------------------------------------------------
def _sage_layer_kernel(a_ref, x_ref, xdst_ref, wl_ref, wr_ref, b_ref,
                       o_ref, acc_ref, dst_ref, deg_ref, *,
                       c_out, apply_relu, apply_log_softmax):
    # a_ref   : [tm, tk]             bf16 unnormalized adjacency (edge counts)
    # x_ref   : [tk, C_in_pad]       bf16 source features (k-indexed view)
    # xdst_ref: [tm, C_in_pad]       bf16 destination/root features (i-indexed view)
    # wl_ref  : [C_in_pad, C_out_pad] bf16 W_l (applied to aggregated neighbors)
    # wr_ref  : [C_in_pad, C_out_pad] bf16 W_r (applied to root features)
    # b_ref   : [1, C_out_pad]       f32  lin_l bias (zero-padded)
    # o_ref   : [tm, C_out_pad]      output block (resident across k)
    # acc_ref : [tm, C_in_pad]       f32  aggregation accumulator (VMEM scratch)
    # dst_ref : [tm, C_out_pad]      f32  x_dst @ W_r + b (VMEM scratch)
    # deg_ref : [tm, 1]              f32  per-destination edge count (VMEM scratch)
    k = pl.program_id(1)

    @pl.when(k == 0)
    def _():
        acc_ref[...] = jnp.zeros_like(acc_ref)
        deg_ref[...] = jnp.zeros_like(deg_ref)
        # Destination-side linear + bias once per i-block, early, so the k==last
        # epilogue tail stays short and MXU pushes are spread across steps.
        dst_ref[...] = (jnp.dot(xdst_ref[...], wr_ref[...],
                                preferred_element_type=jnp.float32)
                        + b_ref[...])

    a = a_ref[...]
    # bf16 MXU matmul, f32 accumulation.
    acc_ref[...] += jnp.dot(a, x_ref[...], preferred_element_type=jnp.float32)
    # Per-row degree from tile row-sums (XLU slot; idle here, effectively free).
    deg_ref[...] += jnp.sum(a.astype(jnp.float32), axis=1, keepdims=True)

    @pl.when(k == pl.num_programs(1) - 1)
    def _():
        # Exact mean normalization (isolated targets -> deg clamped to 1).
        inv_deg = 1.0 / jnp.maximum(deg_ref[...], 1.0)
        agg = (acc_ref[...] * inv_deg).astype(jnp.bfloat16)

        out = dst_ref[...] + jnp.dot(agg, wl_ref[...],
                                     preferred_element_type=jnp.float32)

        if apply_relu:
            out = jnp.maximum(out, 0.0)
        if apply_log_softmax:
            # Mask padded logit columns out of the softmax normalization.
            col = jax.lax.broadcasted_iota(jnp.int32, out.shape, 1)
            valid = col < c_out
            masked = jnp.where(valid, out, -jnp.inf)
            m = jnp.max(masked, axis=-1, keepdims=True)
            e = jnp.where(valid, jnp.exp(out - m), 0.0)
            lse = m + jnp.log(jnp.sum(e, axis=-1, keepdims=True))
            out = out - lse

        o_ref[...] = out.astype(o_ref.dtype)


def sage_layer(a_cnt, x_src, wl, wr, b, *, c_out,
               apply_relu, apply_log_softmax, tm, tk):
    n_dst_pad, n_x_pad = a_cnt.shape
    c_in_pad = x_src.shape[1]
    c_out_pad = wl.shape[1]
    grid_i = n_dst_pad // tm
    grid_k = n_x_pad // tk
    # Hidden layers emit bf16 (halves writeback + next layer's reads); final f32.
    out_dtype = jnp.float32 if apply_log_softmax else jnp.bfloat16
    out_bytes = 4 if apply_log_softmax else 2

    kernel = functools.partial(
        _sage_layer_kernel, c_out=c_out,
        apply_relu=apply_relu, apply_log_softmax=apply_log_softmax)

    flops = (2 * n_dst_pad * n_x_pad * c_in_pad
             + 2 * 2 * n_dst_pad * c_in_pad * c_out_pad)
    transcendentals = n_dst_pad * c_out_pad if apply_log_softmax else 0
    # x_src is re-streamed once per i-block; weights/bias are read once.
    bytes_accessed = (a_cnt.size * 2
                      + grid_i * n_x_pad * c_in_pad * 2
                      + n_dst_pad * c_in_pad * 2
                      + 2 * c_in_pad * c_out_pad * 2
                      + c_out_pad * 4
                      + n_dst_pad * c_out_pad * out_bytes)

    return pl.pallas_call(
        kernel,
        out_shape=jax.ShapeDtypeStruct((n_dst_pad, c_out_pad), out_dtype),
        grid_spec=pltpu.PrefetchScalarGridSpec(
            num_scalar_prefetch=0,
            grid=(grid_i, grid_k),
            in_specs=[
                pl.BlockSpec((tm, tk), lambda i, k: (i, k)),                # adjacency
                pl.BlockSpec((tk, c_in_pad), lambda i, k: (k, 0)),          # x (sources)
                pl.BlockSpec((tm, c_in_pad), lambda i, k: (i, 0)),          # x (root view)
                pl.BlockSpec((c_in_pad, c_out_pad), lambda i, k: (0, 0)),   # W_l
                pl.BlockSpec((c_in_pad, c_out_pad), lambda i, k: (0, 0)),   # W_r
                pl.BlockSpec((1, c_out_pad), lambda i, k: (0, 0)),          # bias
            ],
            out_specs=pl.BlockSpec((tm, c_out_pad), lambda i, k: (i, 0)),
            scratch_shapes=[
                pltpu.VMEM((tm, c_in_pad), jnp.float32),    # aggregation acc
                pltpu.VMEM((tm, c_out_pad), jnp.float32),   # x_dst @ W_r + b
                pltpu.VMEM((tm, 1), jnp.float32),           # degree
            ],
        ),
        compiler_params=pltpu.CompilerParams(
            dimension_semantics=("parallel", "arbitrary"),
            vmem_limit_bytes=_VMEM_LIMIT),
        cost_estimate=pl.CostEstimate(flops=flops,
                                      transcendentals=transcendentals,
                                      bytes_accessed=bytes_accessed),
    )(a_cnt, x_src, x_src, wl, wr, b)


# ----------------------------------------------------------------------------
# SAGE forward: x, adjs -> log-probs (mirrors SAGE.forward with model_type='sage')
# ----------------------------------------------------------------------------
def sage_forward(x, adjs, params):
    num_layers = len(params)
    for i, (edge_index, size) in enumerate(adjs):
        n_src, n_dst = size
        w_l, w_r, b_l = params[i]
        c_in, c_out = w_l.shape
        last = (i == num_layers - 1)

        c_in_pad = _round_up(c_in, 128)
        c_out_pad = _round_up(c_out, 128)
        out_bytes = 4 if last else 2

        # Tile sizes: big as possible within the VMEM budget (bf16 sublane pack ->
        # tm multiple of 16; lane-dense -> tk and channels multiples of 128).
        tm = min(_TM_MAX, _round_up(n_dst, 16))
        tk = min(_TK_MAX, _round_up(n_src, 128))
        # Megacore (v7x): keep >= 2 destination row-blocks when there's enough work.
        if n_dst > 64 and _round_up(n_dst, tm) == tm:
            tm = max(16, _round_up((n_dst + 1) // 2, 16))
        # Shrink tiles until the double-buffered working set fits the budget.
        while tk > 128 and _layer_vmem_bytes(tm, tk, c_in_pad, c_out_pad,
                                             out_bytes) > _VMEM_BUDGET:
            tk = _round_up(tk // 2, 128)
        while tm > 16 and _layer_vmem_bytes(tm, tk, c_in_pad, c_out_pad,
                                            out_bytes) > _VMEM_BUDGET:
            tm = _round_up(tm // 2, 16)

        n_dst_pad = _round_up(n_dst, tm)
        n_x_pad = _round_up(max(n_src, n_dst_pad), tk)

        src, dst = edge_index[0], edge_index[1]

        # Unnormalized bf16 edge-count adjacency built directly in bf16 (no f32
        # scatter + cast round trip). Counts <= 256 stay exact in bf16.
        # TODO(synk): replace the dense O(N_dst*N_src) build with a CSR /
        # scalar-prefetch gather path so cost scales with |E| on large graphs.
        a_cnt = jnp.zeros((n_dst_pad, n_x_pad), jnp.bfloat16)
        a_cnt = a_cnt.at[dst, src].add(jnp.ones(src.shape, jnp.bfloat16))

        # Zero-padded bf16 features. The destination/root view is a prefix of this
        # same array (second BlockSpec) -> no separate padded x_dst copy is built.
        x_src = jnp.zeros((n_x_pad, c_in_pad), jnp.bfloat16)
        x_src = x_src.at[:n_src, :c_in].set(x[:n_src].astype(jnp.bfloat16))

        # Zero-padded bf16 weights (separate W_l / W_r -> no in-kernel concat) + bias.
        wl = jnp.zeros((c_in_pad, c_out_pad), jnp.bfloat16)
        wl = wl.at[:c_in, :c_out].set(w_l.astype(jnp.bfloat16))
        wr = jnp.zeros((c_in_pad, c_out_pad), jnp.bfloat16)
        wr = wr.at[:c_in, :c_out].set(w_r.astype(jnp.bfloat16))
        b = jnp.zeros((1, c_out_pad), jnp.float32).at[:, :c_out].set(
            b_l.reshape(1, -1))

        out = sage_layer(a_cnt, x_src, wl, wr, b, c_out=c_out,
                         apply_relu=not last, apply_log_softmax=last,
                         tm=tm, tk=tk)
        x = out[:n_dst, :c_out]
        # dropout(p=0.6) in eval mode is identity
    return x


# ----------------------------------------------------------------------------
# Pure-JAX f32 reference for validation
# ----------------------------------------------------------------------------
def sage_forward_ref(x, adjs, params):
    num_layers = len(params)
    for i, (edge_index, size) in enumerate(adjs):
        n_src, n_dst = size
        src, dst = edge_index[0], edge_index[1]
        a = jnp.zeros((n_dst, n_src), jnp.float32).at[dst, src].add(1.0)
        deg = jnp.maximum(jnp.sum(a, axis=1, keepdims=True), 1.0)
        a_norm = a / deg
        w_l, w_r, b_l = params[i]
        out = a_norm @ x @ w_l + x[:n_dst] @ w_r + b_l
        if i != num_layers - 1:
            x = jax.nn.relu(out)
        else:
            x = jax.nn.log_softmax(out, axis=-1)
    return x


if __name__ == "__main__":
    key = jax.random.PRNGKey(0)

    # Small, forward-consistent shapes (2-layer neighbor-sampled mini-batch).
    num_layers = 2
    in_channels, hidden_channels, out_channels = 16, 32, 8
    n0, n1, n2 = 32, 16, 8          # hop sizes: layer0 (32->16), layer1 (16->8)
    e0, e1 = 64, 32                 # edges per hop

    k_x, k_e0s, k_e0d, k_e1s, k_e1d, k_w = jax.random.split(key, 6)
    x = jax.random.normal(k_x, (n0, in_channels), jnp.float32)

    edge_index_0 = jnp.stack([
        jax.random.randint(k_e0s, (e0,), 0, n0),
        jax.random.randint(k_e0d, (e0,), 0, n1),
    ])
    edge_index_1 = jnp.stack([
        jax.random.randint(k_e1s, (e1,), 0, n1),
        jax.random.randint(k_e1d, (e1,), 0, n2),
    ])
    adjs = [(edge_index_0, (n0, n1)), (edge_index_1, (n1, n2))]

    # Deterministic parameter init (glorot-ish), layer i: (W_l, W_r, b_l)
    def init_layer(k, c_in, c_out):
        k1, k2 = jax.random.split(k)
        scale = (2.0 / (c_in + c_out)) ** 0.5
        w_l = scale * jax.random.normal(k1, (c_in, c_out), jnp.float32)
        w_r = scale * jax.random.normal(k2, (c_in, c_out), jnp.float32)
        b_l = jnp.zeros((1, c_out), jnp.float32)
        return (w_l, w_r, b_l)

    kw0, kw1 = jax.random.split(k_w)
    params = [
        init_layer(kw0, in_channels, hidden_channels),
        init_layer(kw1, hidden_channels, out_channels),
    ]

    out = sage_forward(x, adjs, params)
    out = jax.block_until_ready(out)

    ref = sage_forward_ref(x, adjs, params)
    assert out.shape == (n2, out_channels), out.shape
    # bf16 MXU operands + bf16 hidden activations vs an f32 reference; exact 1/deg
    # normalization lets this be ~2x tighter than the previous 1e-1 check.
    assert jnp.allclose(out, ref, atol=5e-2, rtol=5e-2), (
        "mismatch vs reference, max abs diff = %f" % float(jnp.max(jnp.abs(out - ref))))

    print("KERNEL_OK")
</pallas_src>

<mosaic_0001>
module attributes {stable_mosaic.version = 11 : i64} {
  func.func @_sage_layer_kernel(%arg0: i32, %arg1: i32, %arg2: memref<16x128xbf16, #tpu.memory_space<vmem>>, %arg3: memref<128x128xbf16, #tpu.memory_space<vmem>>, %arg4: memref<16x128xbf16, #tpu.memory_space<vmem>>, %arg5: memref<128x128xbf16, #tpu.memory_space<vmem>>, %arg6: memref<128x128xbf16, #tpu.memory_space<vmem>>, %arg7: memref<1x128xf32, #tpu.memory_space<vmem>>, %arg8: memref<16x128xbf16, #tpu.memory_space<vmem>>, %arg9: memref<16x128xf32, #tpu.memory_space<vmem>>, %arg10: memref<16x128xf32, #tpu.memory_space<vmem>>, %arg11: memref<16x1xf32, #tpu.memory_space<vmem>>) attributes {dimension_semantics = [#tpu.dimension_semantics<parallel>, #tpu.dimension_semantics<arbitrary>], iteration_bounds = array<i64: 1, 1>, scalar_prefetch = 0 : i64, scratch_operands = 3 : i64, tpu.core_type = #tpu.core_type<tc>, window_params = [{transform_indices = @transform_0, window_bounds = array<i64: 16, 128>}, {transform_indices = @transform_1, window_bounds = array<i64: 128, 128>}, {transform_indices = @transform_2, window_bounds = array<i64: 16, 128>}, {pipeline_mode = #tpu.pipeline_mode<synchronous>, transform_indices = @transform_3, window_bounds = array<i64: 128, 128>}, {pipeline_mode = #tpu.pipeline_mode<synchronous>, transform_indices = @transform_4, window_bounds = array<i64: 128, 128>}, {pipeline_mode = #tpu.pipeline_mode<synchronous>, transform_indices = @transform_5, window_bounds = array<i64: 1, 128>}, {transform_indices = @transform_6, window_bounds = array<i64: 16, 128>}]} {
    %c0_i32 = arith.constant 0 : i32
    %0 = arith.cmpi eq, %arg1, %c0_i32 : i32
    %1 = arith.extui %0 : i1 to i32
    %c0_i32_0 = arith.constant 0 : i32
    %2 = arith.cmpi ne, %1, %c0_i32_0 : i32
    scf.if %2 {
      %cst_15 = arith.constant 0.000000e+00 : f32
      %18 = vector.broadcast %cst_15 : f32 to vector<16x128xf32>
      %c0_16 = arith.constant 0 : index
      %c0_17 = arith.constant 0 : index
      %19 = vector.load %arg9[%c0_16, %c0_17] : memref<16x128xf32, #tpu.memory_space<vmem>>, vector<16x128xf32>
      tpu.vector_store %arg9[%c0_16, %c0_17], %18 {strides = array<i32>} : memref<16x128xf32, #tpu.memory_space<vmem>>, vector<16x128xf32>,
      %cst_18 = arith.constant 0.000000e+00 : f32
      %20 = vector.broadcast %cst_18 : f32 to vector<16x1xf32>
      %c0_19 = arith.constant 0 : index
      %c0_20 = arith.constant 0 : index
      %21 = vector.load %arg11[%c0_19, %c0_20] : memref<16x1xf32, #tpu.memory_space<vmem>>, vector<16x1xf32>
      tpu.vector_store %arg11[%c0_19, %c0_20], %20 {strides = array<i32>} : memref<16x1xf32, #tpu.memory_space<vmem>>, vector<16x1xf32>,
      %c0_21 = arith.constant 0 : index
      %c0_22 = arith.constant 0 : index
      %22 = vector.load %arg4[%c0_21, %c0_22] : memref<16x128xbf16, #tpu.memory_space<vmem>>, vector<16x128xbf16>
      %c0_23 = arith.constant 0 : index
      %c0_24 = arith.constant 0 : index
      %23 = vector.load %arg6[%c0_23, %c0_24] : memref<128x128xbf16, #tpu.memory_space<vmem>>, vector<128x128xbf16>
      %cst_25 = arith.constant dense<0.000000e+00> : vector<16x128xf32>
      %24 = tpu.matmul %22, %23, %cst_25 {dimension_numbers = #tpu.dot_dimension_numbers<[1], [0], [0], [1], [0, 0, 1, 1], [], []>} : vector<16x128xbf16>, vector<128x128xbf16>, vector<16x128xf32> -> vector<16x128xf32>
      %c0_26 = arith.constant 0 : index
      %c0_27 = arith.constant 0 : index
      %25 = vector.load %arg7[%c0_26, %c0_27] : memref<1x128xf32, #tpu.memory_space<vmem>>, vector<1x128xf32>
      %26 = vector.broadcast %25 : vector<1x128xf32> to vector<16x128xf32>
      %27 = arith.addf %24, %26 : vector<16x128xf32>
      %c0_28 = arith.constant 0 : index
      %c0_29 = arith.constant 0 : index
      %28 = vector.load %arg10[%c0_28, %c0_29] : memref<16x128xf32, #tpu.memory_space<vmem>>, vector<16x128xf32>
      tpu.vector_store %arg10[%c0_28, %c0_29], %27 {strides = array<i32>} : memref<16x128xf32, #tpu.memory_space<vmem>>, vector<16x128xf32>,
    } else {
    }
    %c0 = arith.constant 0 : index
    %c0_1 = arith.constant 0 : index
    %3 = vector.load %arg2[%c0, %c0_1] : memref<16x128xbf16, #tpu.memory_space<vmem>>, vector<16x128xbf16>
    %c0_2 = arith.constant 0 : index
    %c0_3 = arith.constant 0 : index
    %4 = vector.load %arg9[%c0_2, %c0_3] : memref<16x128xf32, #tpu.memory_space<vmem>>, vector<16x128xf32>
    %c0_4 = arith.constant 0 : index
    %c0_5 = arith.constant 0 : index
    %5 = vector.load %arg3[%c0_4, %c0_5] : memref<128x128xbf16, #tpu.memory_space<vmem>>, vector<128x128xbf16>
    %cst = arith.constant dense<0.000000e+00> : vector<16x128xf32>
    %6 = tpu.matmul %3, %5, %cst {dimension_numbers = #tpu.dot_dimension_numbers<[1], [0], [0], [1], [0, 0, 1, 1], [], []>} : vector<16x128xbf16>, vector<128x128xbf16>, vector<16x128xf32> -> vector<16x128xf32>
    %7 = arith.addf %4, %6 : vector<16x128xf32>
    %c0_6 = arith.constant 0 : index
    %c0_7 = arith.constant 0 : index
    %8 = vector.load %arg9[%c0_6, %c0_7] : memref<16x128xf32, #tpu.memory_space<vmem>>, vector<16x128xf32>
    tpu.vector_store %arg9[%c0_6, %c0_7], %7 {strides = array<i32>} : memref<16x128xf32, #tpu.memory_space<vmem>>, vector<16x128xf32>,
    %c0_8 = arith.constant 0 : index
    %c0_9 = arith.constant 0 : index
    %9 = vector.load %arg11[%c0_8, %c0_9] : memref<16x1xf32, #tpu.memory_space<vmem>>, vector<16x1xf32>
    %10 = arith.extf %3 : vector<16x128xbf16> to vector<16x128xf32>
    %cst_10 = arith.constant dense<0.000000e+00> : vector<16xf32>
    %11 = vector.multi_reduction <add>, %10, %cst_10 [1] : vector<16x128xf32> to vector<16xf32>
    %12 = vector.shape_cast %11 : vector<16xf32> to vector<16x1xf32>
    %13 = arith.addf %9, %12 : vector<16x1xf32>
    %c0_11 = arith.constant 0 : index
    %c0_12 = arith.constant 0 : index
    %14 = vector.load %arg11[%c0_11, %c0_12] : memref<16x1xf32, #tpu.memory_space<vmem>>, vector<16x1xf32>
    tpu.vector_store %arg11[%c0_11, %c0_12], %13 {strides = array<i32>} : memref<16x1xf32, #tpu.memory_space<vmem>>, vector<16x1xf32>,
    %c0_i32_13 = arith.constant 0 : i32
    %15 = arith.cmpi eq, %arg1, %c0_i32_13 : i32
    %16 = arith.extui %15 : i1 to i32
    %c0_i32_14 = arith.constant 0 : i32
    %17 = arith.cmpi ne, %16, %c0_i32_14 : i32
    scf.if %17 {
      %c0_15 = arith.constant 0 : index
      %c0_16 = arith.constant 0 : index
      %18 = vector.load %arg11[%c0_15, %c0_16] : memref<16x1xf32, #tpu.memory_space<vmem>>, vector<16x1xf32>
      %cst_17 = arith.constant 1.000000e+00 : f32
      %19 = vector.broadcast %cst_17 : f32 to vector<16x1xf32>
      %20 = arith.maximumf %18, %19 : vector<16x1xf32>
      %cst_18 = arith.constant 1.000000e+00 : f32
      %21 = vector.broadcast %cst_18 : f32 to vector<16x1xf32>
      %22 = arith.divf %21, %20 : vector<16x1xf32>
      %c0_19 = arith.constant 0 : index
      %c0_20 = arith.constant 0 : index
      %23 = vector.load %arg9[%c0_19, %c0_20] : memref<16x128xf32, #tpu.memory_space<vmem>>, vector<16x128xf32>
      %24 = vector.broadcast %22 : vector<16x1xf32> to vector<16x128xf32>
      %25 = arith.mulf %23, %24 : vector<16x128xf32>
      %26 = arith.truncf %25 : vector<16x128xf32> to vector<16x128xbf16>
      %c0_21 = arith.constant 0 : index
      %c0_22 = arith.constant 0 : index
      %27 = vector.load %arg10[%c0_21, %c0_22] : memref<16x128xf32, #tpu.memory_space<vmem>>, vector<16x128xf32>
      %c0_23 = arith.constant 0 : index
      %c0_24 = arith.constant 0 : index
      %28 = vector.load %arg5[%c0_23, %c0_24] : memref<128x128xbf16, #tpu.memory_space<vmem>>, vector<128x128xbf16>
      %cst_25 = arith.constant dense<0.000000e+00> : vector<16x128xf32>
      %29 = tpu.matmul %26, %28, %cst_25 {dimension_numbers = #tpu.dot_dimension_numbers<[1], [0], [0], [1], [0, 0, 1, 1], [], []>} : vector<16x128xbf16>, vector<128x128xbf16>, vector<16x128xf32> -> vector<16x128xf32>
      %30 = arith.addf %27, %29 : vector<16x128xf32>
      %cst_26 = arith.constant 0.000000e+00 : f32
      %31 = vector.broadcast %cst_26 : f32 to vector<16x128xf32>
      %32 = arith.maximumf %30, %31 : vector<16x128xf32>
      %33 = arith.truncf %32 : vector<16x128xf32> to vector<16x128xbf16>
      %c0_27 = arith.constant 0 : index
      %c0_28 = arith.constant 0 : index
      %34 = vector.load %arg8[%c0_27, %c0_28] : memref<16x128xbf16, #tpu.memory_space<vmem>>, vector<16x128xbf16>
      tpu.vector_store %arg8[%c0_27, %c0_28], %33 {strides = array<i32>} : memref<16x128xbf16, #tpu.memory_space<vmem>>, vector<16x128xbf16>,
    } else {
    }
    return
  }
  func.func @transform_0(%arg0: i32, %arg1: i32) -> (i32, i32) {
    %c0_i32 = arith.constant 0 : i32
    return %arg0, %arg1 : i32, i32
  }
  func.func @transform_1(%arg0: i32, %arg1: i32) -> (i32, i32) {
    %c0_i32 = arith.constant 0 : i32
    %c0_i32_0 = arith.constant 0 : i32
    return %arg1, %c0_i32 : i32, i32
  }
  func.func @transform_2(%arg0: i32, %arg1: i32) -> (i32, i32) {
    %c0_i32 = arith.constant 0 : i32
    %c0_i32_0 = arith.constant 0 : i32
    return %arg0, %c0_i32 : i32, i32
  }
  func.func @transform_3(%arg0: i32, %arg1: i32) -> (i32, i32) {
    %c0_i32 = arith.constant 0 : i32
    %c0_i32_0 = arith.constant 0 : i32
    %c0_i32_1 = arith.constant 0 : i32
    return %c0_i32, %c0_i32_0 : i32, i32
  }
  func.func @transform_4(%arg0: i32, %arg1: i32) -> (i32, i32) {
    %c0_i32 = arith.constant 0 : i32
    %c0_i32_0 = arith.constant 0 : i32
    %c0_i32_1 = arith.constant 0 : i32
    return %c0_i32, %c0_i32_0 : i32, i32
  }
  func.func @transform_5(%arg0: i32, %arg1: i32) -> (i32, i32) {
    %c0_i32 = arith.constant 0 : i32
    %c0_i32_0 = arith.constant 0 : i32
    %c0_i32_1 = arith.constant 0 : i32
    return %c0_i32, %c0_i32_0 : i32, i32
  }
  func.func @transform_6(%arg0: i32, %arg1: i32) -> (i32, i32) {
    %c0_i32 = arith.constant 0 : i32
    %c0_i32_0 = arith.constant 0 : i32
    return %arg0, %c0_i32 : i32, i32
  }
}

</mosaic_0001>

<bundles_post_ra>
// kernel: tpu_custom_call.1
= control target key start
LH: loop header
LB: loop body
LE: loop exit
PB: predicated region body
PF: predicated region fallthrough
CT: control target
= control target key end

     0   :  { %11 = vsyncpa [#allocation6], 0  ;;  %s1027_s0 = inlined_call_operand.hbm [shape: bf16[16,128], index: 0, kind: input, shape index: {}]   ;;  %s1028_s1 = inlined_call_operand.hbm [shape: bf16[128,128], index: 1, kind: input, shape index: {}]   ;;  %s1029_s2 = inlined_call_operand.hbm [shape: bf16[128,128], index: 2, kind: input, shape index: {}]   ;;  %s1030_s3 = inlined_call_operand.hbm [shape: bf16[128,128], index: 3, kind: input, shape index: {}]   ;;  %s1031_s4 = inlined_call_operand.hbm [shape: bf16[128,128], index: 4, kind: input, shape index: {}]   ;;  %s1032_s5 = inlined_call_operand.vmem [shape: f32[1,128], index: 5, kind: input, shape index: {}]   ;;  %s1033_s6 = inlined_call_operand.hbm [shape: bf16[16,128], index: 6, kind: output, shape index: {}]  }
   0x1   :  { %12 = vsyncpa [#allocation9], 0 }
   0x2   :  { %13 = vsyncpa [#allocation12], 0 }
   0x3   :  { %14 = vsyncpa [#allocation7], 0  ;;  %s835_s21 = smov [#allocation8]   ;;  %s836_s23 = smov [#allocation11]  }
   0x4   :  { %s32_s22 = sshll.u32 %s835_s21, 4  ;;  %s56_s24 = sshll.u32 %s836_s23, 4  ;;  %s33_s22 = int_to_ptr.vmem [resolvable:$true] %s32_s22  ;;  %s881_s24 = int_to_ptr.vmem [resolvable:$true] %s56_s24 }
   0x5   :  { %s695_s27 = scalar_lea.hbm %s1028_s1, 1024 }
   0x6   :  { %p696_p0 = scmp.ne.s32.totalorder %s1028_s1, %s695_s27  ;;  %p699_p1 = scmp.lt.u32.totalorder %s695_s27, %s1028_s1 }
   0x8   :  { %p701_p2 = pnand %p699_p1, %p696_p0 }
   0xa   :  { %704 = shalt.err (!%p701_p2)
}
   0xb   :  { %s705_s8 = scalar_lea.vmem %s33_s22, 1024  ;;  %p710_p4 = scmp.lt.s32.totalorder %s33_s22, %s33_s22 }
   0xc   :  { %p706_p3 = scmp.ne.s32.totalorder %s33_s22, %s705_s8  ;;  %p711_p5 = scmp.lt.s32.totalorder %s705_s8, %s705_s8 }
   0xe   :  { %p712_p6 = por %p711_p5, %p710_p4 }
  0x10   :  { %p713_p7 = pnand %p712_p6, %p706_p3 }
  0x12   :  { %716 = shalt.err (!%p713_p7)
}
  0x13   :  { %s837_s9 = smov 64   ;;  %s838_s10 = smov 4  }
  0x14   :  { %38 = dma.hbm_to_vmem [thread:$0]  %s1028_s1, 1024, %s33_s22, [#allocation9], %s837_s9, %s837_s9, %s838_s10  }
  0x15   :  { %s717_s15 = scalar_lea.hbm %s1030_s3, 1024 }
  0x16   :  { %p718_p8 = scmp.ne.s32.totalorder %s1030_s3, %s717_s15  ;;  %p721_p9 = scmp.lt.u32.totalorder %s717_s15, %s1030_s3 }
  0x18   :  { %p723_p10 = pnand %p721_p9, %p718_p8 }
  0x1a   :  { %726 = shalt.err (!%p723_p10)
}
  0x1b   :  { %s727_s20 = scalar_lea.vmem %s881_s24, 1024  ;;  %p732_p12 = scmp.lt.s32.totalorder %s881_s24, %s881_s24 }
  0x1c   :  { %p728_p11 = scmp.ne.s32.totalorder %s881_s24, %s727_s20  ;;  %p733_p13 = scmp.lt.s32.totalorder %s727_s20, %s727_s20 }
  0x1e   :  { %p734_p0 = por %p733_p13, %p732_p12 }
  0x20   :  { %p735_p1 = pnand %p734_p0, %p728_p11 }
  0x22   :  { %738 = shalt.err (!%p735_p1)
}
  0x23   :  { %62 = dma.hbm_to_vmem [thread:$0]  %s1030_s3, 1024, %s881_s24, [#allocation12], %s837_s9, %s837_s9, %s838_s10  }
  0x24   :  { %s839_s22 = smov [#allocation5]   ;;  %s840_s25 = smov [#allocation10]  }
  0x25   :  { %s20_s23 = sshll.u32 %s839_s22, 4  ;;  %s44_s26 = sshll.u32 %s840_s25, 4  ;;  %s21_s23 = int_to_ptr.vmem [resolvable:$true] %s20_s23  ;;  %s918_s26 = int_to_ptr.vmem [resolvable:$true] %s44_s26 }
  0x26   :  { %s739_s29 = scalar_lea.hbm %s1027_s0, 128 }
  0x27   :  { %p740_p2 = scmp.ne.s32.totalorder %s1027_s0, %s739_s29  ;;  %p743_p3 = scmp.lt.u32.totalorder %s739_s29, %s1027_s0 }
  0x29   :  { %p745_p4 = pnand %p743_p3, %p740_p2 }
  0x2b   :  { %748 = shalt.err (!%p745_p4)
}
  0x2c   :  { %s749_s3 = scalar_lea.vmem %s21_s23, 128  ;;  %p754_p6 = scmp.lt.s32.totalorder %s21_s23, %s21_s23 }
  0x2d   :  { %p750_p5 = scmp.ne.s32.totalorder %s21_s23, %s749_s3  ;;  %p755_p7 = scmp.lt.s32.totalorder %s749_s3, %s749_s3 }
  0x2f   :  { %p756_p8 = por %p755_p7, %p754_p6 }
  0x31   :  { %p757_p9 = pnand %p756_p8, %p750_p5 }
  0x33   :  { %760 = shalt.err (!%p757_p9)
}
  0x34   :  { %26 = dma.hbm_to_vmem [thread:$0]  %s1027_s0, 128, %s21_s23, [#allocation6], %s837_s9, %s837_s9, %s838_s10  }
  0x35   :  { %s761_s15 = scalar_lea.hbm %s1029_s2, 128  ;;  %s763_s20 = scalar_lea.hbm %s1029_s2, 1024 }
  0x36   :  { %p762_p10 = scmp.ne.s32.totalorder %s1029_s2, %s761_s15  ;;  %p764_p11 = scmp.lt.u32.totalorder %s763_s20, %s761_s15 }
  0x37   :  { %p765_p12 = scmp.lt.u32.totalorder %s761_s15, %s1029_s2 }
  0x39   :  { %p766_p13 = por %p765_p12, %p764_p11 }
  0x3b   :  { %p767_p0 = pnand %p766_p13, %p762_p10 }
  0x3d   :  { %770 = shalt.err (!%p767_p0)
}
  0x3e   :  { %s771_s0 = scalar_lea.vmem %s918_s26, 128  ;;  %p776_p2 = scmp.lt.s32.totalorder %s918_s26, %s918_s26 }
  0x3f   :  { %p772_p1 = scmp.ne.s32.totalorder %s918_s26, %s771_s0  ;;  %p777_p3 = scmp.lt.s32.totalorder %s771_s0, %s771_s0 }
  0x41   :  { %p778_p4 = por %p777_p3, %p776_p2 }
  0x43   :  { %p779_p5 = pnand %p778_p4, %p772_p1 }
  0x45   :  { %782 = shalt.err (!%p779_p5)
}
  0x46   :  { %50 = dma.hbm_to_vmem [thread:$0]  %s1029_s2, 128, %s918_s26, [#allocation9], %s837_s9, %s837_s9, %s838_s10  }
  0x47   :  { %s841_s25 = smov [#allocation13]   ;;  %s783_s30 = scalar_lea.hbm %s1031_s4, 1024 }
  0x48   :  { %s68_s27 = sshll.u32 %s841_s25, 4  ;;  %p784_p6 = scmp.ne.s32.totalorder %s1031_s4, %s783_s30  ;;  %s69_s27 = int_to_ptr.vmem [resolvable:$true] %s68_s27 }
  0x49   :  { %p787_p7 = scmp.lt.u32.totalorder %s783_s30, %s1031_s4 }
  0x4b   :  { %p789_p8 = pnand %p787_p7, %p784_p6 }
  0x4d   :  { %792 = shalt.err (!%p789_p8)
}
  0x4e   :  { %s793_s24 = scalar_lea.vmem %s69_s27, 1024  ;;  %p798_p10 = scmp.lt.s32.totalorder %s69_s27, %s69_s27 }
  0x4f   :  { %p794_p9 = scmp.ne.s32.totalorder %s69_s27, %s793_s24  ;;  %p799_p11 = scmp.lt.s32.totalorder %s793_s24, %s793_s24 }
  0x51   :  { %p800_p12 = por %p799_p11, %p798_p10 }
  0x53   :  { %p801_p13 = pnand %p800_p12, %p794_p9 }
  0x55   :  { %804 = shalt.err (!%p801_p13)
}
  0x56   :  { %74 = dma.hbm_to_vmem [thread:$0]  %s1031_s4, 1024, %s69_s27, [#allocation12], %s837_s9, %s837_s9, %s838_s10  }
  0x57   :  { %827 = dma.done.wait [#allocation6], 128  }
  0x58   :  { %828 = vsyncadd [#allocation6], 4294967168 }
  0x59   :  { %829 = dma.done.wait [#allocation9], 1152  }
  0x5a   :  { %830 = vsyncadd [#allocation9], 4294966144 }
  0x5b   :  { %831 = dma.done.wait [#allocation12], 2048  }
  0x5c   :  { %832 = vsyncadd [#allocation12], 4294965248  ;;  %vm99_vm0 = vcmask 7168   ;;  %v842_v0 = vmov 0.0   ;;  %vm843_vm1 = vmmov 0   ;;  %v224_v1 = vld [vmem:[#allocation5] sm:$0xff]  }
  0x5d   :  { %605 = vmatprep.subr.bf16.mxu1 %v842_v0  ;;  %621 = vmatprep.mubr.msk.bf16.mxu1 %vm843_vm1, %v842_v0  ;;  %100 = vst.msk [vmem:[#allocation4] sm:$0xff] %vm99_vm0, %v842_v0  ;;  %101 = vst.msk [vmem:[#allocation4 + $0x8] sm:$0xff] %vm99_vm0, %v842_v0  ;;  %v345_v2 = vunpack.c.l.bf16 %v224_v1  ;;  %v665_v3 = vld [vmem:[#allocation8] sm:$0xff]   ;;  %v346_v4 = vunpack.c.h.bf16 %v224_v1  ;;  %v666_v5 = vld [vmem:[#allocation8 + $0x8] sm:$0xff]   ;;  %v844_v11 = vmov 0   ;;  %s845_s13 = smov [#allocation14]  }
  0x5e   :  { %585 = vmatprep.subr.bf16.mxu0 %v842_v0  ;;  %601 = vmatprep.mubr.msk.bf16.mxu0 %vm843_vm1, %v842_v0  ;;  %v667_v6 = vld [vmem:[#allocation8 + $0x10] sm:$0xff]   ;;  %v668_v7 = vld [vmem:[#allocation8 + $0x18] sm:$0xff]   ;;  %v669_v8 = vld [vmem:[#allocation8 + $0x20] sm:$0xff]   ;;  %s508_s14 = sshll.u32 %s845_s13, 4  ;;  %s509_s14 = int_to_ptr.vmem [resolvable:$true] %s508_s14 }
  0x5f   :  { %347 = vadd.xlane.f32.xlu0 %v345_v2  ;;  %606 = vmatpush3.bf16.msra.mxu1 %v665_v3  ;;  %v670_v9 = vld [vmem:[#allocation8 + $0x28] sm:$0xff]   ;;  %v671_v10 = vld [vmem:[#allocation8 + $0x30] sm:$0xff]   ;;  %v672_v12 = vld [vmem:[#allocation8 + $0x38] sm:$0xff]   ;;  %s805_s15 = scalar_lea.vmem %s509_s14, 128  ;;  %p810_p1 = scmp.lt.s32.totalorder %s509_s14, %s509_s14 }
  0x60   :  { %607 = vmatprep.subr.bf16.mxu1 %v842_v0  ;;  %662 = vset.pattern.permute.xlu1 %v844_v11  ;;  %v673_v13 = vld [vmem:[#allocation13] sm:$0xff]   ;;  %v674_v14 = vld [vmem:[#allocation13 + $0x8] sm:$0xff]   ;;  %v675_v15 = vld [vmem:[#allocation13 + $0x10] sm:$0xff]   ;;  %p806_p0 = scmp.ne.s32.totalorder %s509_s14, %s805_s15  ;;  %p811_p2 = scmp.lt.s32.totalorder %s805_s15, %s805_s15 }
  0x61   :  { %663 = vset.pattern.permute.xlu0 %v844_v11  ;;  %586 = vmatpush3.bf16.msra.mxu0 %v673_v13  ;;  %v676_v16 = vld [vmem:[#allocation13 + $0x18] sm:$0xff]   ;;  %v677_v17 = vld [vmem:[#allocation13 + $0x20] sm:$0xff]   ;;  %v678_v18 = vld [vmem:[#allocation13 + $0x28] sm:$0xff]  }
  0x62   :  { %587 = vmatprep.subr.bf16.mxu0 %v842_v0  ;;  %v679_v19 = vld [vmem:[#allocation13 + $0x30] sm:$0xff]   ;;  %v680_v20 = vld [vmem:[#allocation13 + $0x38] sm:$0xff]   ;;  %v682_v22 = vld [vmem:[#allocation11] sm:$0xff]   ;;  %p812_p3 = por %p811_p2, %p810_p1 }
  0x63   :  { %349 = vadd.xlane.f32.xlu0 %v346_v4  ;;  %608 = vmatpush3.bf16.msra.mxu1 %v666_v5  ;;  %v681_v21 = vld [vmem:[#allocation10] sm:$0xff]   ;;  %v683_v23 = vld [vmem:[#allocation11 + $0x8] sm:$0xff]   ;;  %v684_v24 = vld [vmem:[#allocation11 + $0x10] sm:$0xff]  }
  0x64   :  { %609 = vmatprep.subr.bf16.mxu1 %v842_v0  ;;  %v685_v25 = vld [vmem:[#allocation11 + $0x18] sm:$0xff]   ;;  %v686_v26 = vld [vmem:[#allocation11 + $0x20] sm:$0xff]   ;;  %v687_v27 = vld [vmem:[#allocation11 + $0x28] sm:$0xff]   ;;  %p813_p4 = pnand %p812_p3, %p806_p0 }
  0x65   :  { %588 = vmatpush3.bf16.msra.mxu0 %v674_v14  ;;  %v343_v28 = vld [vmem:[#allocation4] sm:$0xff]  ;;  %v344_v31 = vld [vmem:[#allocation4 + $0x8] sm:$0xff]  ;;  %v688_v39 = vld [vmem:[#allocation11 + $0x30] sm:$0xff]  }
  0x66   :  { %589 = vmatprep.subr.bf16.mxu0 %v842_v0  ;;  %v689_v41 = vld [vmem:[#allocation11 + $0x38] sm:$0xff]   ;;  %v522_v51 = vld [vmem:[%s1032_s5] ss:$0 sm:$0xff] }
  0x67   :  { %610 = vmatpush3.bf16.msra.mxu1 %v667_v6 }
  0x68   :  { %611 = vmatprep.subr.bf16.mxu1 %v842_v0 }
  0x69   :  { %590 = vmatpush3.bf16.msra.mxu0 %v675_v15 }
  0x6a   :  { %591 = vmatprep.subr.bf16.mxu0 %v842_v0 }
  0x6b   :  { %612 = vmatpush3.bf16.msra.mxu1 %v668_v7 }
  0x6c   :  { %613 = vmatprep.subr.bf16.mxu1 %v842_v0 }
  0x6d   :  { %592 = vmatpush3.bf16.msra.mxu0 %v676_v16 }
  0x6e   :  { %593 = vmatprep.subr.bf16.mxu0 %v842_v0 }
  0x6f   :  { %614 = vmatpush3.bf16.msra.mxu1 %v669_v8 }
  0x70   :  { %615 = vmatprep.subr.bf16.mxu1 %v842_v0 }
  0x71   :  { %594 = vmatpush3.bf16.msra.mxu0 %v677_v17 }
  0x72   :  { %595 = vmatprep.subr.bf16.mxu0 %v842_v0 }
  0x73   :  { %616 = vmatpush3.bf16.msra.mxu1 %v670_v9 }
  0x74   :  { %617 = vmatprep.subr.bf16.mxu1 %v842_v0 }
  0x75   :  { %596 = vmatpush3.bf16.msra.mxu0 %v678_v18 }
  0x76   :  { %597 = vmatprep.subr.bf16.mxu0 %v842_v0 }
  0x77   :  { %618 = vmatpush3.bf16.msra.mxu1 %v671_v10 }
  0x78   :  { %619 = vmatprep.subr.bf16.mxu1 %v842_v0 }
  0x79   :  { %598 = vmatpush3.bf16.msra.mxu0 %v679_v19 }
  0x7a   :  { %599 = vmatprep.subr.bf16.mxu0 %v842_v0 }
  0x7b   :  { %620 = vmatpush3.bf16.msra.mxu1 %v672_v12 }
  0x7d   :  { %600 = vmatpush3.bf16.msra.mxu0 %v680_v20 }
  0x7e   :  { %622 = vmatmul.mubr.bf16.vlgmr.msra.gmra.mrb[0].mxu1 %v224_v1  ;;  %625 = vmatprep.subr.bf16.mxu0 %v842_v0 }
  0x80   :  { %602 = vmatmul.mubr.bf16.vlgmr.msra.gmra.mrb[0].mxu0 %v681_v21 }
  0x81   :  { %626 = vmatpush3.bf16.msra.mxu0 %v682_v22  ;;  %641 = vmatprep.mubr.msk.bf16.mxu0 %vm843_vm1, %v842_v0 }
  0x82   :  { %627 = vmatprep.subr.bf16.mxu0 %v842_v0 }
  0x85   :  { %628 = vmatpush3.bf16.msra.mxu0 %v683_v23 }
  0x86   :  { %629 = vmatprep.subr.bf16.mxu0 %v842_v0 }
  0x89   :  { %630 = vmatpush3.bf16.msra.mxu0 %v684_v24 }
  0x8a   :  { %631 = vmatprep.subr.bf16.mxu0 %v842_v0 }
  0x8d   :  { %632 = vmatpush3.bf16.msra.mxu0 %v685_v25 }
  0x8e   :  { %633 = vmatprep.subr.bf16.mxu0 %v842_v0 }
  0x91   :  { %634 = vmatpush3.bf16.msra.mxu0 %v686_v26 }
  0x92   :  { %635 = vmatprep.subr.bf16.mxu0 %v842_v0 }
  0x95   :  { %636 = vmatpush3.bf16.msra.mxu0 %v687_v27 }
  0x96   :  { %637 = vmatprep.subr.bf16.mxu0 %v842_v0 }
  0x99   :  { %638 = vmatpush3.bf16.msra.mxu0 %v688_v39 }
  0x9a   :  { %639 = vmatprep.subr.bf16.mxu0 %v842_v0 }
  0x9d   :  { %640 = vmatpush3.bf16.msra.mxu0 %v689_v41 }
  0xec   :  { %v348_v29 = vpop.xlane.xlu0 %347 }
  0xed   :  { %v351_v30 = vadd.f32 %v348_v29, %v343_v28 }
  0xef   :  { %354 = vst.msk [vmem:[#allocation4] sm:$0xff] %vm99_vm0, %v351_v30 }
  0xf0   :  { %v350_v32 = vpop.xlane.xlu0 %349 }
  0xf1   :  { %v352_v33 = vadd.f32 %v350_v32, %v344_v31 }
  0xf3   :  { %355 = vst.msk [vmem:[#allocation4 + $0x8] sm:$0xff] %vm99_vm0, %v352_v33 }
  0xf6   :  { %v359_v34 = vld [vmem:[#allocation4] sm:$0xff] }
  0xf7   :  { %v361_v35 = vmax.f32 %v359_v34, 1.0 }
  0xf9   :  { %691 = vrcp.f32 %v361_v35 }
  0xfa   :  { %v360_v36 = vld [vmem:[#allocation4 + $0x8] sm:$0xff] }
  0xfb   :  { %v362_v37 = vmax.f32 %v360_v36, 1.0 }
  0xfd   :  { %693 = vrcp.f32 %v362_v37 }
 0x103   :  { %v692_v38 = vpop.eup %691 }
 0x104   :  { %371 = vperm.xlu1 %662, %v692_v38  }
 0x107   :  { %v694_v40 = vpop.eup %693 }
 0x108   :  { %376 = vperm.xlu1 %662, %v694_v40  }
 0x151   :  { %v332_v42 = vpop.f32.mrb[0].mxu1 }
 0x152   :  { %v623_v43 = vpop.f32.mrb[1].mxu1 }
 0x153   :  { %v335_v44 = vpop.f32.mrb[2].mxu1 }
 0x154   :  { %v624_v45 = vpop.f32.mrb[3].mxu1 }
 0x183   :  { %v372_v46 = vpop.permute.xlu1 %371 }
 0x184   :  { %v379_v48 = vmul.f32 %v372_v46, %v332_v42 }
 0x187   :  { %v377_v47 = vpop.permute.xlu1 %376 }
 0x188   :  { %v380_v49 = vmul.f32 %v377_v47, %v335_v44 }
 0x18a   :  { %v381_v50 = vpack.c.bf16 %v380_v49, %v379_v48 }
 0x18c   :  { %642 = vmatmul.mubr.bf16.vlgmr.msra.gmra.mrb[0].mxu0 %v381_v50 }
 0x25f   :  { %v482_v52 = vpop.f32.mrb[0].mxu0 }
 0x260   :  { %v645_v53 = vadd.f32 %v522_v51, %v482_v52  ;;  %v643_v54 = vpop.f32.mrb[1].mxu0 }
 0x261   :  { %v485_v55 = vpop.f32.mrb[2].mxu0 }
 0x262   :  { %v646_v56 = vadd.f32 %v522_v51, %v485_v55  ;;  %v644_v57 = vpop.f32.mrb[3].mxu0  ;;  %v491_v58 = vmax.f32 %v645_v53, 0.0 }
 0x264   :  { %v492_v59 = vmax.f32 %v646_v56, 0.0 }
 0x266   :  { %v556_v60 = vpack.c.bf16 %v492_v59, %v491_v58 }
 0x268   :  { %557 = vst [vmem:[#allocation14] sm:$0xff] %v556_v60  }
 0x269   :  { %816 = shalt.err (!%p813_p4)
}
 0x26a   :  { %s817_s17 = scalar_lea.hbm %s1033_s6, 128 }
 0x26b   :  { %p818_p5 = scmp.ne.s32.totalorder %s1033_s6, %s817_s17  ;;  %p821_p6 = scmp.lt.u32.totalorder %s817_s17, %s1033_s6 }
 0x26d   :  { %p823_p7 = pnand %p821_p6, %p818_p5 }
 0x26f   :  { %826 = shalt.err (!%p823_p7)
}
 0x270   :  { %514 = dma.vmem_to_hbm [thread:$0]  %s509_s14, 128, %s1033_s6, [#allocation7], %s837_s9, %s837_s9, %s838_s10  }
 0x271   :  { %833 = dma.done.wait [#allocation7], 128  }
 0x272   :  { %834 = vsyncadd [#allocation7], 4294967168 }
 0x273   :  { %518 = vsyncpa [#allocation6], 1 }
 0x274   :  { %519 = vsyncpa [#allocation9], 1 }
 0x275   :  { %520 = vsyncpa [#allocation12], 1 }
 0x276   :  { %521 = vsyncpa [#allocation7], 1 }

</bundles_post_ra>
